<compile_context>
chip_gen: v5e
topology: v5e:2x2
jax: 0.10.0
libtpu: 0.0.40
codegen_flags: <defaults>
</compile_context>

<pallas_src>
import functools
import math

import jax
import jax.numpy as jnp
from jax.experimental import pallas as pl
from jax.experimental.pallas import tpu as pltpu


def _round_up(x, m):
    return ((x + m - 1) // m) * m


# ---------------------------------------------------------------------------
# Kernel 1: per-node feature transform + per-head attention logits.
#   h     = x @ W_pad                         [TILE_N, H*Dp]
#   a_src = h @ Asrc (block-diagonal)         [TILE_N, H]
#   a_dst = h @ Adst (block-diagonal)         [TILE_N, H]
# ---------------------------------------------------------------------------
def gat_transform_kernel(x_ref, w_ref, asrc_w_ref, adst_w_ref,
                         h_ref, asrc_ref, adst_ref):
    h = jnp.dot(x_ref[...], w_ref[...], preferred_element_type=jnp.float32)
    h_ref[...] = h.astype(h_ref.dtype)
    asrc_ref[...] = jnp.dot(h, asrc_w_ref[...],
                            preferred_element_type=jnp.float32).astype(asrc_ref.dtype)
    adst_ref[...] = jnp.dot(h, adst_w_ref[...],
                            preferred_element_type=jnp.float32).astype(adst_ref.dtype)


# ---------------------------------------------------------------------------
# Kernel 2: masked multi-head softmax attention + aggregation for one tile of
# destination-node rows.
# ---------------------------------------------------------------------------
def gat_attention_kernel(cnt_ref, adst_ref, asrc_t_ref, h_ref, b_ref, o_ref,
                         *, heads, d_pad, negative_slope):
    cnt = cnt_ref[...].astype(jnp.float32)          # [TILE_N, N] edge multiplicities
    neigh_mask = cnt > 0.0

    outs = []
    for hh in range(heads):                          # static unroll over heads
        # e[i, j] = LeakyReLU(a_dst_i + a_src_j), masked to existing edges.
        e = adst_ref[:, hh:hh + 1] + asrc_t_ref[hh:hh + 1, :]      # [TILE_N, N]
        e = jnp.where(e >= 0.0, e, negative_slope * e)
        e = jnp.where(neigh_mask, e, -1e30)
        m = jnp.max(e, axis=-1, keepdims=True)
        # Multiplicity-weighted softmax == PyG edge softmax with repeated edges.
        w = cnt * jnp.exp(e - m)
        alpha = w / jnp.sum(w, axis=-1, keepdims=True)
        outs.append(jnp.dot(alpha, h_ref[:, hh * d_pad:(hh + 1) * d_pad],
                            preferred_element_type=jnp.float32))

    out = jnp.concatenate(outs, axis=-1) + b_ref[...]
    # GATLayer activation (concat=True -> ReLU); trailing dropout = identity (eval).
    o_ref[...] = jnp.maximum(out, 0.0).astype(o_ref.dtype)


def gat_layer_forward(x, edge_index, params, *, heads, negative_slope=0.2,
                      tile_n_max=256):
    """x: [N, input_dim] f32; edge_index: [2, E] int32 (row 0 = src, row 1 = dst)."""
    n, in_dim = x.shape
    w, a_src, a_dst, bias = params["w"], params["a_src"], params["a_dst"], params["b"]
    head_dim = a_src.shape[1]
    out_dim = heads * head_dim

    # Pad head_dim so the concatenated feature axis is lane dense (multiple of 128).
    d_pad = _round_up(head_dim, 128 // math.gcd(heads, 128))
    hd_pad = heads * d_pad

    # Row tiling: pick largest tile up to tile_n_max, pad N to a tile multiple.
    tile_n = min(tile_n_max, _round_up(n, 8))
    n_pad = _round_up(n, tile_n)
    grid = (n_pad // tile_n,)

    # Scatter real (head-major) columns into padded per-head blocks (glue).
    col = (jnp.arange(heads)[:, None] * d_pad
           + jnp.arange(head_dim)[None, :]).reshape(-1)
    head_of = jnp.repeat(jnp.arange(heads), head_dim)
    w_pad = jnp.zeros((in_dim, hd_pad), jnp.float32).at[:, col].set(w)
    b_pad = jnp.zeros((1, hd_pad), jnp.float32).at[0, col].set(bias)
    asrc_mat = jnp.zeros((hd_pad, heads), jnp.float32).at[col, head_of].set(a_src.reshape(-1))
    adst_mat = jnp.zeros((hd_pad, heads), jnp.float32).at[col, head_of].set(a_dst.reshape(-1))

    x_pad = jnp.zeros((n_pad, in_dim), x.dtype).at[:n].set(x)

    # Dense [dst, src] edge-count matrix (glue): drop self loops, add exactly one
    # self loop per node (PyG GATConv add_self_loops=True default). Padded rows
    # only attend to themselves (their zero features give zero output rows).
    src, dst = edge_index[0], edge_index[1]
    keep = (src != dst).astype(jnp.float32)
    cnt = jnp.zeros((n_pad, n_pad), jnp.float32).at[dst, src].add(keep)
    diag = jnp.arange(n_pad)
    cnt = cnt.at[diag, diag].set(1.0)
    # Small integer counts are exact in bf16 -> halves O(N^2) HBM traffic / VMEM.
    cnt_bf16 = cnt.astype(jnp.bfloat16)

    parallel = pltpu.CompilerParams(dimension_semantics=("parallel",))

    # ---------------- kernel 1: transform ----------------
    h, asrc, adst = pl.pallas_call(
        gat_transform_kernel,
        out_shape=(
            jax.ShapeDtypeStruct((n_pad, hd_pad), jnp.float32),
            jax.ShapeDtypeStruct((n_pad, heads), jnp.float32),
            jax.ShapeDtypeStruct((n_pad, heads), jnp.float32),
        ),
        grid=grid,
        in_specs=[
            pl.BlockSpec((tile_n, in_dim), lambda i: (i, 0)),   # streamed row tile
            pl.BlockSpec((in_dim, hd_pad), lambda i: (0, 0)),   # resident weights
            pl.BlockSpec((hd_pad, heads), lambda i: (0, 0)),
            pl.BlockSpec((hd_pad, heads), lambda i: (0, 0)),
        ],
        out_specs=(
            pl.BlockSpec((tile_n, hd_pad), lambda i: (i, 0)),
            pl.BlockSpec((tile_n, heads), lambda i: (i, 0)),
            pl.BlockSpec((tile_n, heads), lambda i: (i, 0)),
        ),
        compiler_params=parallel,
    )(x_pad, w_pad, asrc_mat, adst_mat)

    asrc_t = asrc.T  # [heads, n_pad] so each head gives a [1, N] row (glue)

    # ---------------- kernel 2: attention + aggregation ----------------
    cost = pl.CostEstimate(
        flops=2 * n_pad * n_pad * heads * d_pad + 8 * n_pad * n_pad * heads,
        transcendentals=n_pad * n_pad * heads,
        bytes_accessed=(cnt_bf16.size * 2 + h.size * 4 + asrc.size * 4
                        + adst.size * 4 + b_pad.size * 4 + n_pad * hd_pad * 4),
    )
    kernel = functools.partial(gat_attention_kernel, heads=heads, d_pad=d_pad,
                               negative_slope=negative_slope)
    out_p = pl.pallas_call(
        kernel,
        out_shape=jax.ShapeDtypeStruct((n_pad, hd_pad), jnp.float32),
        grid=grid,
        in_specs=[
            pl.BlockSpec((tile_n, n_pad), lambda i: (i, 0)),    # adjacency row tile
            pl.BlockSpec((tile_n, heads), lambda i: (i, 0)),    # a_dst row tile
            pl.BlockSpec((heads, n_pad), lambda i: (0, 0)),     # resident a_src
            pl.BlockSpec((n_pad, hd_pad), lambda i: (0, 0)),    # resident features
            pl.BlockSpec((1, hd_pad), lambda i: (0, 0)),        # resident bias
        ],
        out_specs=pl.BlockSpec((tile_n, hd_pad), lambda i: (i, 0)),
        compiler_params=parallel,
        cost_estimate=cost,
    )(cnt_bf16, adst, asrc_t, h, b_pad)

    # Strip row and per-head column padding (glue).
    out = out_p[:n].reshape(n, heads, d_pad)[:, :, :head_dim].reshape(n, out_dim)
    return out


if __name__ == "__main__":
    num_nodes = 16
    num_edges = 32
    input_dim = 8
    output_dim = 16
    heads = 8
    head_dim = output_dim // heads  # concat=True => output_dim % heads == 0

    key = jax.random.PRNGKey(0)
    kx, ke, kw, ka, kb, kbias = jax.random.split(key, 6)

    x = jax.random.normal(kx, (num_nodes, input_dim), dtype=jnp.float32)
    edge_index = jax.random.randint(ke, (2, num_edges), 0, num_nodes, dtype=jnp.int32)

    params = {
        "w": jax.random.normal(kw, (input_dim, heads * head_dim), jnp.float32) * 0.3,
        "a_src": jax.random.normal(ka, (heads, head_dim), jnp.float32) * 0.3,
        "a_dst": jax.random.normal(kb, (heads, head_dim), jnp.float32) * 0.3,
        "b": jax.random.normal(kbias, (heads * head_dim,), jnp.float32) * 0.1,
    }

    out = gat_layer_forward(x, edge_index, params, heads=heads)
    out = jax.block_until_ready(out)

    # Pure-JAX reference (dense formulation of GATConv + ReLU, eval-mode dropout).
    def reference(x, edge_index, params, heads, head_dim, negative_slope=0.2):
        n = x.shape[0]
        src, dst = edge_index[0], edge_index[1]
        keep = (src != dst).astype(jnp.float32)
        cnt = jnp.zeros((n, n), jnp.float32).at[dst, src].add(keep)
        cnt = cnt.at[jnp.arange(n), jnp.arange(n)].set(1.0)
        h = (x @ params["w"]).reshape(n, heads, head_dim)
        a_s = jnp.einsum("nhd,hd->nh", h, params["a_src"])
        a_d = jnp.einsum("nhd,hd->nh", h, params["a_dst"])
        e = a_d[:, None, :] + a_s[None, :, :]          # [dst, src, head]
        e = jnp.where(e >= 0, e, negative_slope * e)
        e = jnp.where((cnt > 0)[:, :, None], e, -1e30)
        m = e.max(axis=1, keepdims=True)
        wgt = cnt[:, :, None] * jnp.exp(e - m)
        alpha = wgt / wgt.sum(axis=1, keepdims=True)
        agg = jnp.einsum("ijh,jhd->ihd", alpha, h).reshape(n, heads * head_dim)
        return jnp.maximum(agg + params["b"][None, :], 0.0)

    ref = reference(x, edge_index, params, heads, head_dim)
    assert out.shape == (num_nodes, output_dim)
    err = float(jnp.max(jnp.abs(out - ref)))
    assert jnp.allclose(out, ref, atol=1e-4, rtol=1e-4), f"mismatch vs reference, max err {err}"

    print("KERNEL_OK")
</pallas_src>

<mosaic_0001>
module attributes {stable_mosaic.version = 11 : i64} {
  func.func @gat_transform_kernel(%arg0: i32, %arg1: memref<16x8xf32, #tpu.memory_space<vmem>>, %arg2: memref<8x128xf32, #tpu.memory_space<vmem>>, %arg3: memref<128x8xf32, #tpu.memory_space<vmem>>, %arg4: memref<128x8xf32, #tpu.memory_space<vmem>>, %arg5: memref<16x128xf32, #tpu.memory_space<vmem>>, %arg6: memref<16x8xf32, #tpu.memory_space<vmem>>, %arg7: memref<16x8xf32, #tpu.memory_space<vmem>>) attributes {dimension_semantics = [#tpu.dimension_semantics<parallel>], iteration_bounds = array<i64: 1>, scalar_prefetch = 0 : i64, scratch_operands = 0 : i64, tpu.core_type = #tpu.core_type<tc>, window_params = [{transform_indices = @transform_0, window_bounds = array<i64: 16, 8>}, {pipeline_mode = #tpu.pipeline_mode<synchronous>, transform_indices = @transform_1, window_bounds = array<i64: 8, 128>}, {pipeline_mode = #tpu.pipeline_mode<synchronous>, transform_indices = @transform_2, window_bounds = array<i64: 128, 8>}, {pipeline_mode = #tpu.pipeline_mode<synchronous>, transform_indices = @transform_3, window_bounds = array<i64: 128, 8>}, {transform_indices = @transform_4, window_bounds = array<i64: 16, 128>}, {transform_indices = @transform_5, window_bounds = array<i64: 16, 8>}, {transform_indices = @transform_6, window_bounds = array<i64: 16, 8>}]} {
    %c0 = arith.constant 0 : index
    %c0_0 = arith.constant 0 : index
    %0 = vector.load %arg1[%c0, %c0_0] : memref<16x8xf32, #tpu.memory_space<vmem>>, vector<16x8xf32>
    %c0_1 = arith.constant 0 : index
    %c0_2 = arith.constant 0 : index
    %1 = vector.load %arg2[%c0_1, %c0_2] : memref<8x128xf32, #tpu.memory_space<vmem>>, vector<8x128xf32>
    %cst = arith.constant dense<0.000000e+00> : vector<16x128xf32>
    %2 = tpu.matmul %0, %1, %cst {dimension_numbers = #tpu.dot_dimension_numbers<[1], [0], [0], [1], [0, 0, 1, 1], [], []>} : vector<16x8xf32>, vector<8x128xf32>, vector<16x128xf32> -> vector<16x128xf32>
    %c0_3 = arith.constant 0 : index
    %c0_4 = arith.constant 0 : index
    %3 = vector.load %arg5[%c0_3, %c0_4] : memref<16x128xf32, #tpu.memory_space<vmem>>, vector<16x128xf32>
    tpu.vector_store %arg5[%c0_3, %c0_4], %2 {strides = array<i32>} : memref<16x128xf32, #tpu.memory_space<vmem>>, vector<16x128xf32>,
    %c0_5 = arith.constant 0 : index
    %c0_6 = arith.constant 0 : index
    %4 = vector.load %arg3[%c0_5, %c0_6] : memref<128x8xf32, #tpu.memory_space<vmem>>, vector<128x8xf32>
    %cst_7 = arith.constant dense<0.000000e+00> : vector<16x8xf32>
    %5 = tpu.matmul %2, %4, %cst_7 {dimension_numbers = #tpu.dot_dimension_numbers<[1], [0], [0], [1], [0, 0, 1, 1], [], []>} : vector<16x128xf32>, vector<128x8xf32>, vector<16x8xf32> -> vector<16x8xf32>
    %c0_8 = arith.constant 0 : index
    %c0_9 = arith.constant 0 : index
    %6 = vector.load %arg6[%c0_8, %c0_9] : memref<16x8xf32, #tpu.memory_space<vmem>>, vector<16x8xf32>
    tpu.vector_store %arg6[%c0_8, %c0_9], %5 {strides = array<i32>} : memref<16x8xf32, #tpu.memory_space<vmem>>, vector<16x8xf32>,
    %c0_10 = arith.constant 0 : index
    %c0_11 = arith.constant 0 : index
    %7 = vector.load %arg4[%c0_10, %c0_11] : memref<128x8xf32, #tpu.memory_space<vmem>>, vector<128x8xf32>
    %cst_12 = arith.constant dense<0.000000e+00> : vector<16x8xf32>
    %8 = tpu.matmul %2, %7, %cst_12 {dimension_numbers = #tpu.dot_dimension_numbers<[1], [0], [0], [1], [0, 0, 1, 1], [], []>} : vector<16x128xf32>, vector<128x8xf32>, vector<16x8xf32> -> vector<16x8xf32>
    %c0_13 = arith.constant 0 : index
    %c0_14 = arith.constant 0 : index
    %9 = vector.load %arg7[%c0_13, %c0_14] : memref<16x8xf32, #tpu.memory_space<vmem>>, vector<16x8xf32>
    tpu.vector_store %arg7[%c0_13, %c0_14], %8 {strides = array<i32>} : memref<16x8xf32, #tpu.memory_space<vmem>>, vector<16x8xf32>,
    return
  }
  func.func @transform_0(%arg0: i32) -> (i32, i32) {
    %c0_i32 = arith.constant 0 : i32
    %c0_i32_0 = arith.constant 0 : i32
    return %arg0, %c0_i32 : i32, i32
  }
  func.func @transform_1(%arg0: i32) -> (i32, i32) {
    %c0_i32 = arith.constant 0 : i32
    %c0_i32_0 = arith.constant 0 : i32
    %c0_i32_1 = arith.constant 0 : i32
    return %c0_i32, %c0_i32_0 : i32, i32
  }
  func.func @transform_2(%arg0: i32) -> (i32, i32) {
    %c0_i32 = arith.constant 0 : i32
    %c0_i32_0 = arith.constant 0 : i32
    %c0_i32_1 = arith.constant 0 : i32
    return %c0_i32, %c0_i32_0 : i32, i32
  }
  func.func @transform_3(%arg0: i32) -> (i32, i32) {
    %c0_i32 = arith.constant 0 : i32
    %c0_i32_0 = arith.constant 0 : i32
    %c0_i32_1 = arith.constant 0 : i32
    return %c0_i32, %c0_i32_0 : i32, i32
  }
  func.func @transform_4(%arg0: i32) -> (i32, i32) {
    %c0_i32 = arith.constant 0 : i32
    %c0_i32_0 = arith.constant 0 : i32
    return %arg0, %c0_i32 : i32, i32
  }
  func.func @transform_5(%arg0: i32) -> (i32, i32) {
    %c0_i32 = arith.constant 0 : i32
    %c0_i32_0 = arith.constant 0 : i32
    return %arg0, %c0_i32 : i32, i32
  }
  func.func @transform_6(%arg0: i32) -> (i32, i32) {
    %c0_i32 = arith.constant 0 : i32
    %c0_i32_0 = arith.constant 0 : i32
    return %arg0, %c0_i32 : i32, i32
  }
}

</mosaic_0001>

<bundles_post_ra>
// kernel: tpu_custom_call.1
= control target key start
LH: loop header
LB: loop body
LE: loop exit
PB: predicated region body
PF: predicated region fallthrough
CT: control target
= control target key end

     0   :  { %vm24_vm0 = vcmask 64512   ;;  %s391_s0 = inlined_call_operand.vmem [shape: f32[16,8], index: 0, kind: input, shape index: {}]   ;;  %s392_s1 = inlined_call_operand.vmem [shape: f32[8,128], index: 1, kind: input, shape index: {}]   ;;  %s393_s2 = inlined_call_operand.vmem [shape: f32[128,8], index: 2, kind: input, shape index: {}]   ;;  %s394_s3 = inlined_call_operand.vmem [shape: f32[128,8], index: 3, kind: input, shape index: {}]   ;;  %s395_s4 = inlined_call_operand.hbm [shape: f32[16,128], index: 4, kind: output, shape index: {0}]   ;;  %s396_s5 = inlined_call_operand.vmem [shape: f32[16,8], index: 5, kind: output, shape index: {1}]   ;;  %s397_s6 = inlined_call_operand.vmem [shape: f32[16,8], index: 6, kind: output, shape index: {2}]  }
   0x1   :  { %v23_v0 = vld [vmem:[%s392_s1] sm:$0xff]  ;;  %v71_v2 = vld [vmem:[%s393_s2 + $0x78] sm:$0xff]  ;;  %v70_v4 = vld [vmem:[%s393_s2 + $0x70] sm:$0xff] }
   0x2   :  { %v21_v1 = vld [vmem:[%s391_s0] sm:$0xff]  ;;  %46 = vmatpush.msra.mxu0 %v23_v0  ;;  %v112_v3 = vld [vmem:[%s394_s3 + $0x78] sm:$0xff]  ;;  %72 = vmatpush.msra.mxu1 %v71_v2  ;;  %v111_v5 = vld [vmem:[%s394_s3 + $0x70] sm:$0xff] }
   0x3   :  { %164 = vmatmul.msk.f32.vlgmr.msra.gmra.mxu0 %vm24_vm0, %v21_v1  ;;  %v69_v6 = vld [vmem:[%s393_s2 + $0x68] sm:$0xff]  ;;  %166 = vmatpush.msra.mxu3 %v71_v2  ;;  %v68_v8 = vld [vmem:[%s393_s2 + $0x60] sm:$0xff]  ;;  %v67_v11 = vld [vmem:[%s393_s2 + $0x58] sm:$0xff] }
   0x4   :  { %113 = vmatpush.msrb.mxu0 %v112_v3  ;;  %73 = vmatpush.msra.mxu1 %v70_v4  ;;  %v110_v7 = vld [vmem:[%s394_s3 + $0x68] sm:$0xff]  ;;  %v109_v9 = vld [vmem:[%s394_s3 + $0x60] sm:$0xff]  ;;  %v108_v12 = vld [vmem:[%s394_s3 + $0x58] sm:$0xff] }
   0x5   :  { %182 = vmatpush.msra.mxu2 %v112_v3  ;;  %167 = vmatpush.msra.mxu3 %v70_v4  ;;  %v22_v10 = vld [vmem:[%s391_s0 + $0x8] sm:$0xff]  ;;  %v66_v13 = vld [vmem:[%s393_s2 + $0x50] sm:$0xff] }
   0x6   :  { %114 = vmatpush.msrb.mxu0 %v111_v5  ;;  %74 = vmatpush.msra.mxu1 %v69_v6  ;;  %v107_v14 = vld [vmem:[%s394_s3 + $0x50] sm:$0xff]  ;;  %v65_v15 = vld [vmem:[%s393_s2 + $0x48] sm:$0xff] }
   0x7   :  { %183 = vmatpush.msra.mxu2 %v111_v5  ;;  %168 = vmatpush.msra.mxu3 %v69_v6 }
   0x8   :  { %115 = vmatpush.msrb.mxu0 %v110_v7  ;;  %75 = vmatpush.msra.mxu1 %v68_v8 }
   0x9   :  { %184 = vmatpush.msra.mxu2 %v110_v7  ;;  %169 = vmatpush.msra.mxu3 %v68_v8 }
   0xa   :  { %116 = vmatpush.msrb.mxu0 %v109_v9  ;;  %76 = vmatpush.msra.mxu1 %v67_v11 }
   0xb   :  { %165 = vmatmul.msk.f32.gmra.mxu0 %vm24_vm0, %v22_v10  ;;  %185 = vmatpush.msra.mxu2 %v109_v9 }
   0xc   :  { %117 = vmatpush.msrb.mxu0 %v108_v12 }
   0xd   :  { %12 = vsyncpa [#allocation3], 0  ;;  %77 = vmatpush.msra.mxu1 %v66_v13  ;;  %v106_v16 = vld [vmem:[%s394_s3 + $0x48] sm:$0xff]  ;;  %170 = vmatpush.msra.mxu3 %v67_v11  ;;  %v64_v17 = vld [vmem:[%s393_s2 + $0x40] sm:$0xff]  ;;  %s227_s14 = smov [#allocation2]   ;;  %s144_s17 = sshll.u32 %s395_s4, 4  ;;  %s145_s17 = int_to_ptr.hbm [resolvable:$true] %s144_s17 }
   0xe   :  { %118 = vmatpush.msrb.mxu0 %v107_v14  ;;  %186 = vmatpush.msra.mxu2 %v108_v12  ;;  %v105_v18 = vld [vmem:[%s394_s3 + $0x40] sm:$0xff]  ;;  %v63_v19 = vld [vmem:[%s393_s2 + $0x38] sm:$0xff]  ;;  %v62_v21 = vld [vmem:[%s393_s2 + $0x30] sm:$0xff]  ;;  %s142_s15 = sshll.u32 %s227_s14, 4  ;;  %s229_s18 = smov 8   ;;  %s143_s15 = int_to_ptr.vmem [resolvable:$true] %s142_s15 }
   0xf   :  { %78 = vmatpush.msra.mxu1 %v65_v15  ;;  %171 = vmatpush.msra.mxu3 %v66_v13  ;;  %v104_v20 = vld [vmem:[%s394_s3 + $0x38] sm:$0xff]  ;;  %v103_v22 = vld [vmem:[%s394_s3 + $0x30] sm:$0xff]  ;;  %v61_v23 = vld [vmem:[%s393_s2 + $0x28] sm:$0xff] }
  0x10   :  { %119 = vmatpush.msrb.mxu0 %v106_v16  ;;  %187 = vmatpush.msra.mxu2 %v107_v14  ;;  %v102_v24 = vld [vmem:[%s394_s3 + $0x28] sm:$0xff]  ;;  %v60_v25 = vld [vmem:[%s393_s2 + $0x20] sm:$0xff]  ;;  %v59_v27 = vld [vmem:[%s393_s2 + $0x18] sm:$0xff] }
  0x11   :  { %79 = vmatpush.msra.mxu1 %v64_v17  ;;  %172 = vmatpush.msra.mxu3 %v65_v15  ;;  %v101_v26 = vld [vmem:[%s394_s3 + $0x20] sm:$0xff]  ;;  %v100_v28 = vld [vmem:[%s394_s3 + $0x18] sm:$0xff]  ;;  %v58_v29 = vld [vmem:[%s393_s2 + $0x10] sm:$0xff] }
  0x12   :  { %120 = vmatpush.msrb.mxu0 %v105_v18  ;;  %188 = vmatpush.msra.mxu2 %v106_v16  ;;  %v99_v30 = vld [vmem:[%s394_s3 + $0x10] sm:$0xff]  ;;  %v57_v31 = vld [vmem:[%s393_s2 + $0x8] sm:$0xff]  ;;  %v56_v33 = vld [vmem:[%s393_s2] sm:$0xff] }
  0x13   :  { %80 = vmatpush.msra.mxu1 %v63_v19  ;;  %173 = vmatpush.msra.mxu3 %v64_v17  ;;  %v98_v32 = vld [vmem:[%s394_s3 + $0x8] sm:$0xff]  ;;  %v97_v34 = vld [vmem:[%s394_s3] sm:$0xff]  ;;  %s228_s3 = smov 128  }
  0x14   :  { %121 = vmatpush.msrb.mxu0 %v104_v20  ;;  %189 = vmatpush.msra.mxu2 %v105_v18 }
  0x15   :  { %81 = vmatpush.msra.mxu1 %v62_v21  ;;  %174 = vmatpush.msra.mxu3 %v63_v19 }
  0x16   :  { %122 = vmatpush.msrb.mxu0 %v103_v22  ;;  %190 = vmatpush.msra.mxu2 %v104_v20 }
  0x17   :  { %82 = vmatpush.msra.mxu1 %v61_v23  ;;  %175 = vmatpush.msra.mxu3 %v62_v21 }
  0x18   :  { %123 = vmatpush.msrb.mxu0 %v102_v24  ;;  %191 = vmatpush.msra.mxu2 %v103_v22 }
  0x19   :  { %83 = vmatpush.msra.mxu1 %v60_v25  ;;  %176 = vmatpush.msra.mxu3 %v61_v23 }
  0x1a   :  { %124 = vmatpush.msrb.mxu0 %v101_v26  ;;  %192 = vmatpush.msra.mxu2 %v102_v24 }
  0x1b   :  { %84 = vmatpush.msra.mxu1 %v59_v27  ;;  %177 = vmatpush.msra.mxu3 %v60_v25 }
  0x1c   :  { %125 = vmatpush.msrb.mxu0 %v100_v28  ;;  %193 = vmatpush.msra.mxu2 %v101_v26 }
  0x1d   :  { %85 = vmatpush.msra.mxu1 %v58_v29  ;;  %178 = vmatpush.msra.mxu3 %v59_v27 }
  0x1e   :  { %126 = vmatpush.msrb.mxu0 %v99_v30  ;;  %194 = vmatpush.msra.mxu2 %v100_v28 }
  0x1f   :  { %86 = vmatpush.msra.mxu1 %v57_v31  ;;  %179 = vmatpush.msra.mxu3 %v58_v29 }
  0x20   :  { %127 = vmatpush.msrb.mxu0 %v98_v32  ;;  %195 = vmatpush.msra.mxu2 %v99_v30 }
  0x21   :  { %180 = vmatpush.msra.mxu3 %v57_v31  ;;  %87 = vmatpush.msra.mxu1 %v56_v33 }
  0x22   :  { %196 = vmatpush.msra.mxu2 %v98_v32  ;;  %128 = vmatpush.msrb.mxu0 %v97_v34 }
  0x23   :  { %181 = vmatpush.msra.mxu3 %v56_v33 }
  0x24   :  { %197 = vmatpush.msra.mxu2 %v97_v34 }
  0x80   :  { %v48_v35 = vpop.f32.mrf.mxu0 }
  0x81   :  { %54 = vst [vmem:[#allocation2] sm:$0xff] %v48_v35  ;;  %88 = vmatmul.f32.vlgmr.msra.gmra.mxu1 %v48_v35  ;;  %129 = vmatmul.f32.vlgmr.msrb.gmra.mxu0 %v48_v35 }
  0x88   :  { %v51_v36 = vpop.f32.mrf.mxu0 }
  0x89   :  { %55 = vst [vmem:[#allocation2 + $0x8] sm:$0xff] %v51_v36  ;;  %91 = vmatmul.f32.vlgmr.msra.gmra.mxu3 %v51_v36  ;;  %132 = vmatmul.f32.vlgmr.msra.gmra.mxu2 %v51_v36 }
  0x8a   :  { %150 = dma.vmem_to_hbm [thread:$0]  %s143_s15, 256, %s145_s17, [#allocation3], %s228_s3, %s228_s3, %s229_s18  }
  0xfe   :  { %v89_v37 = vpop.f32.mrf.mxu1  ;;  %v130_v38 = vpop.f32.mrf.mxu0 }
  0xff   :  { %95 = vst.msk [vmem:[%s396_s5] sm:$0xff] %vm24_vm0, %v89_v37 }
 0x100   :  { %136 = vst.msk [vmem:[%s397_s6] sm:$0xff] %vm24_vm0, %v130_v38 }
 0x10c   :  { %v92_v39 = vpop.f32.mrf.mxu3  ;;  %v133_v40 = vpop.f32.mrf.mxu2 }
 0x10d   :  { %96 = vst.msk [vmem:[%s396_s5 + $0x8] sm:$0xff] %vm24_vm0, %v92_v39 }
 0x10e   :  { %137 = vst.msk [vmem:[%s397_s6 + $0x8] sm:$0xff] %vm24_vm0, %v133_v40 }
 0x10f   :  { %225 = dma.done.wait [#allocation3], 256  }
 0x110   :  { %226 = vsyncadd [#allocation3], 4294967040 }
 0x111   :  { %163 = vsyncpa [#allocation3], 1 }

</bundles_post_ra>
